<compile_context>
chip_gen: v5e
topology: v5e:2x2
jax: 0.10.0
libtpu: 0.0.40
codegen_flags: <defaults>
</compile_context>

<pallas_src>
import jax
import jax.numpy as jnp
from jax.experimental import pallas as pl
from jax.experimental.pallas import tpu as pltpu


def gdw_pool_kernel(x_ref, we_ref, be_ref, wd_ref, bd_ref, o_ref):
    # x_ref : (W, Cin, B)   w-major slab of B samples (batch dense on lanes)
    # we_ref: (Cout, Cin)   expansion weight (kernel size 1 squeezed)
    # be_ref: (Cout, 1)     expansion bias
    # wd_ref: (Cout, W)     depthwise weight
    # bd_ref: (Cout, 1)     depthwise bias
    # o_ref : (Cout, B)     lane-dense output block
    W = x_ref.shape[0]

    we = we_ref[...]
    be = be_ref[...].astype(jnp.float32)
    wd = wd_ref[...].astype(jnp.float32)
    bd = bd_ref[...].astype(jnp.float32)

    acc = jnp.zeros(o_ref.shape, jnp.float32)
    # W is a small static constant; unrolled so every slice/matmul is static and the
    # MXU pushes pipeline back-to-back.
    for w in range(W):
        # Expansion (pointwise conv) for spatial position w: MXU matmul, f32 accumulate.
        y = jnp.dot(we, x_ref[w], preferred_element_type=jnp.float32)   # (Cout, B)
        y = y + be                                                       # (Cout,1) broadcast
        y = y * jax.nn.sigmoid(y)                                        # SiLU (exp on EUP)
        # Global depthwise conv fused into the accumulation (VPU).
        acc = acc + wd[:, w:w + 1] * y

    z = acc + bd
    z = z * jax.nn.sigmoid(z)
    o_ref[...] = z.astype(o_ref.dtype)


def _choose_block_n(N, Cin, W, Cout, x_itemsize, budget_bytes=8 * 1024 * 1024, cap=2048):
    """Samples per grid step: whole batch if it fits ~budget, else a multiple of 128."""
    # Double-buffered x tile + f32 accumulator / transient / output per sample.
    per_sample = 2 * W * Cin * x_itemsize + 4 * Cout * 4
    fit = min(cap, max(1, budget_bytes // max(per_sample, 1)))
    if N <= fit:
        return N
    return max(128, (fit // 128) * 128)


def gdw_pool1d(x, w_exp, b_exp, w_dw, b_dw, *, block_n=None):
    """x: (N, Cin, W), w_exp: (Cout, Cin), b_exp: (Cout, 1), w_dw: (Cout, W),
    b_dw: (Cout, 1)  ->  (N, Cout, 1)."""
    N, Cin, W = x.shape
    Cout = w_exp.shape[0]
    B = block_n if block_n is not None else _choose_block_n(
        N, Cin, W, Cout, x.dtype.itemsize)

    # w-major, batch-on-lanes layout: (W, Cin, N).  (Single transpose outside the kernel;
    # a production pipeline would keep the activation in this layout upstream.)
    xw = jnp.transpose(x, (2, 1, 0))

    # Pad the batch so B divides it; padded samples are discarded after the call.
    Np = ((N + B - 1) // B) * B
    if Np != N:
        xw = jnp.pad(xw, ((0, 0), (0, 0), (0, Np - N)))

    out = pl.pallas_call(
        gdw_pool_kernel,
        out_shape=jax.ShapeDtypeStruct((Cout, Np), x.dtype),
        grid_spec=pltpu.PrefetchScalarGridSpec(
            num_scalar_prefetch=0,
            grid=(Np // B,),
            in_specs=[
                pl.BlockSpec((W, Cin, B), lambda i: (0, 0, i)),   # x slab, tiled on lanes
                pl.BlockSpec((Cout, Cin), lambda i: (0, 0)),      # resident across steps
                pl.BlockSpec((Cout, 1), lambda i: (0, 0)),
                pl.BlockSpec((Cout, W), lambda i: (0, 0)),
                pl.BlockSpec((Cout, 1), lambda i: (0, 0)),
            ],
            out_specs=pl.BlockSpec((Cout, B), lambda i: (0, i)),  # lane-dense output
        ),
        compiler_params=pltpu.CompilerParams(
            dimension_semantics=("parallel",),   # independent batch blocks (megacore split)
            vmem_limit_bytes=64 * 1024 * 1024,
        ),
    )(xw, w_exp, b_exp, w_dw, b_dw)

    # (Cout, Npad) -> (N, Cout, 1)
    return jnp.transpose(out[:, :N]).reshape(N, Cout, 1)


def _reference(x, w_exp, b_exp, w_dw, b_dw):
    # Pure-JAX reference of the PyTorch forward.
    y = jnp.einsum("oc,ncw->now", w_exp, x) + b_exp[None, :, :]
    y = y * jax.nn.sigmoid(y)
    z = jnp.sum(w_dw[None] * y, axis=-1, keepdims=True) + b_dw[None, :, :]
    z = z * jax.nn.sigmoid(z)
    return z


def _make_params(key, Cin, Cout, W, dtype=jnp.float32):
    ke, kd = jax.random.split(key)
    # nn.init.normal_ with std ~ 1/sqrt(fan_in * kernel_size), zero bias.
    std_exp = 1.0 / (Cin * 1) ** 0.5
    std_dw = 1.0 / (1 * W) ** 0.5
    w_exp = std_exp * jax.random.normal(ke, (Cout, Cin), dtype=dtype)
    b_exp = jnp.zeros((Cout, 1), dtype=dtype)
    w_dw = std_dw * jax.random.normal(kd, (Cout, W), dtype=dtype)
    b_dw = jnp.zeros((Cout, 1), dtype=dtype)
    return w_exp, b_exp, w_dw, b_dw


if __name__ == "__main__":
    key = jax.random.PRNGKey(0)
    k1, k2, k3, k4 = jax.random.split(key, 4)

    # --- Small shapes consistent with the module (single block, grid = 1) ---
    N, Cin, Cout, W = 2, 4, 8, 16
    x = jax.random.normal(k1, (N, Cin, W), dtype=jnp.float32)
    w_exp, b_exp, w_dw, b_dw = _make_params(k2, Cin, Cout, W)

    out = gdw_pool1d(x, w_exp, b_exp, w_dw, b_dw)
    out = jax.block_until_ready(out)
    ref = _reference(x, w_exp, b_exp, w_dw, b_dw)
    assert out.shape == (N, Cout, 1)
    assert jnp.allclose(out, ref, atol=1e-5, rtol=1e-5)

    # --- Multi-block path: 128 samples per grid step, grid = (2,) ---
    N2, Cin2, Cout2, W2 = 256, 8, 16, 16
    x2 = jax.random.normal(k3, (N2, Cin2, W2), dtype=jnp.float32)
    w_exp2, b_exp2, w_dw2, b_dw2 = _make_params(k4, Cin2, Cout2, W2)

    out2 = gdw_pool1d(x2, w_exp2, b_exp2, w_dw2, b_dw2, block_n=128)
    out2 = jax.block_until_ready(out2)
    ref2 = _reference(x2, w_exp2, b_exp2, w_dw2, b_dw2)
    assert out2.shape == (N2, Cout2, 1)
    assert jnp.allclose(out2, ref2, atol=1e-5, rtol=1e-5)

    print("KERNEL_OK")
</pallas_src>

<mosaic_0001>
module attributes {stable_mosaic.version = 11 : i64} {
  func.func @gdw_pool_kernel(%arg0: i32, %arg1: memref<16x4x2xf32, #tpu.memory_space<vmem>>, %arg2: memref<8x4xf32, #tpu.memory_space<vmem>>, %arg3: memref<8x1xf32, #tpu.memory_space<vmem>>, %arg4: memref<8x16xf32, #tpu.memory_space<vmem>>, %arg5: memref<8x1xf32, #tpu.memory_space<vmem>>, %arg6: memref<8x2xf32, #tpu.memory_space<vmem>>) attributes {dimension_semantics = [#tpu.dimension_semantics<parallel>], iteration_bounds = array<i64: 1>, scalar_prefetch = 0 : i64, scratch_operands = 0 : i64, tpu.core_type = #tpu.core_type<tc>, window_params = [{transform_indices = @transform_0, window_bounds = array<i64: 16, 4, 2>}, {pipeline_mode = #tpu.pipeline_mode<synchronous>, transform_indices = @transform_1, window_bounds = array<i64: 8, 4>}, {pipeline_mode = #tpu.pipeline_mode<synchronous>, transform_indices = @transform_2, window_bounds = array<i64: 8, 1>}, {pipeline_mode = #tpu.pipeline_mode<synchronous>, transform_indices = @transform_3, window_bounds = array<i64: 8, 16>}, {pipeline_mode = #tpu.pipeline_mode<synchronous>, transform_indices = @transform_4, window_bounds = array<i64: 8, 1>}, {transform_indices = @transform_5, window_bounds = array<i64: 8, 2>}]} {
    %c0 = arith.constant 0 : index
    %c0_0 = arith.constant 0 : index
    %0 = vector.load %arg2[%c0, %c0_0] : memref<8x4xf32, #tpu.memory_space<vmem>>, vector<8x4xf32>
    %c0_1 = arith.constant 0 : index
    %c0_2 = arith.constant 0 : index
    %1 = vector.load %arg3[%c0_1, %c0_2] : memref<8x1xf32, #tpu.memory_space<vmem>>, vector<8x1xf32>
    %c0_3 = arith.constant 0 : index
    %c0_4 = arith.constant 0 : index
    %2 = vector.load %arg4[%c0_3, %c0_4] : memref<8x16xf32, #tpu.memory_space<vmem>>, vector<8x16xf32>
    %c0_5 = arith.constant 0 : index
    %c0_6 = arith.constant 0 : index
    %3 = vector.load %arg5[%c0_5, %c0_6] : memref<8x1xf32, #tpu.memory_space<vmem>>, vector<8x1xf32>
    %cst = arith.constant 0.000000e+00 : f32
    %4 = vector.broadcast %cst : f32 to vector<8x2xf32>
    %c0_7 = arith.constant 0 : index
    %c0_8 = arith.constant 0 : index
    %c0_9 = arith.constant 0 : index
    %5 = vector.load %arg1[%c0_7, %c0_8, %c0_9] : memref<16x4x2xf32, #tpu.memory_space<vmem>>, vector<1x4x2xf32>
    %6 = vector.shape_cast %5 : vector<1x4x2xf32> to vector<4x2xf32>
    %cst_10 = arith.constant dense<0.000000e+00> : vector<8x2xf32>
    %7 = tpu.matmul %0, %6, %cst_10 {dimension_numbers = #tpu.dot_dimension_numbers<[1], [0], [0], [1], [0, 0, 1, 1], [], []>} : vector<8x4xf32>, vector<4x2xf32>, vector<8x2xf32> -> vector<8x2xf32>
    %8 = vector.broadcast %1 : vector<8x1xf32> to vector<8x2xf32>
    %9 = arith.addf %7, %8 : vector<8x2xf32>
    %10 = arith.negf %9 : vector<8x2xf32>
    %11 = math.exp %10 : vector<8x2xf32>
    %cst_11 = arith.constant 1.000000e+00 : f32
    %12 = vector.broadcast %cst_11 : f32 to vector<8x2xf32>
    %13 = arith.addf %12, %11 : vector<8x2xf32>
    %14 = arith.divf %12, %13 : vector<8x2xf32>
    %15 = arith.mulf %9, %14 : vector<8x2xf32>
    %16 = vector.extract_strided_slice %2 {offsets = [0, 0], sizes = [8, 1], strides = [1, 1]} : vector<8x16xf32> to vector<8x1xf32>
    %17 = vector.broadcast %16 : vector<8x1xf32> to vector<8x2xf32>
    %18 = arith.mulf %17, %15 : vector<8x2xf32>
    %19 = arith.addf %4, %18 : vector<8x2xf32>
    %c1 = arith.constant 1 : index
    %c0_12 = arith.constant 0 : index
    %c0_13 = arith.constant 0 : index
    %20 = vector.load %arg1[%c1, %c0_12, %c0_13] : memref<16x4x2xf32, #tpu.memory_space<vmem>>, vector<1x4x2xf32>
    %21 = vector.shape_cast %20 : vector<1x4x2xf32> to vector<4x2xf32>
    %cst_14 = arith.constant dense<0.000000e+00> : vector<8x2xf32>
    %22 = tpu.matmul %0, %21, %cst_14 {dimension_numbers = #tpu.dot_dimension_numbers<[1], [0], [0], [1], [0, 0, 1, 1], [], []>} : vector<8x4xf32>, vector<4x2xf32>, vector<8x2xf32> -> vector<8x2xf32>
    %23 = vector.broadcast %1 : vector<8x1xf32> to vector<8x2xf32>
    %24 = arith.addf %22, %23 : vector<8x2xf32>
    %25 = arith.negf %24 : vector<8x2xf32>
    %26 = math.exp %25 : vector<8x2xf32>
    %cst_15 = arith.constant 1.000000e+00 : f32
    %27 = vector.broadcast %cst_15 : f32 to vector<8x2xf32>
    %28 = arith.addf %27, %26 : vector<8x2xf32>
    %29 = arith.divf %27, %28 : vector<8x2xf32>
    %30 = arith.mulf %24, %29 : vector<8x2xf32>
    %31 = vector.extract_strided_slice %2 {offsets = [0, 1], sizes = [8, 1], strides = [1, 1]} : vector<8x16xf32> to vector<8x1xf32>
    %32 = vector.broadcast %31 : vector<8x1xf32> to vector<8x2xf32>
    %33 = arith.mulf %32, %30 : vector<8x2xf32>
    %34 = arith.addf %19, %33 : vector<8x2xf32>
    %c2 = arith.constant 2 : index
    %c0_16 = arith.constant 0 : index
    %c0_17 = arith.constant 0 : index
    %35 = vector.load %arg1[%c2, %c0_16, %c0_17] : memref<16x4x2xf32, #tpu.memory_space<vmem>>, vector<1x4x2xf32>
    %36 = vector.shape_cast %35 : vector<1x4x2xf32> to vector<4x2xf32>
    %cst_18 = arith.constant dense<0.000000e+00> : vector<8x2xf32>
    %37 = tpu.matmul %0, %36, %cst_18 {dimension_numbers = #tpu.dot_dimension_numbers<[1], [0], [0], [1], [0, 0, 1, 1], [], []>} : vector<8x4xf32>, vector<4x2xf32>, vector<8x2xf32> -> vector<8x2xf32>
    %38 = vector.broadcast %1 : vector<8x1xf32> to vector<8x2xf32>
    %39 = arith.addf %37, %38 : vector<8x2xf32>
    %40 = arith.negf %39 : vector<8x2xf32>
    %41 = math.exp %40 : vector<8x2xf32>
    %cst_19 = arith.constant 1.000000e+00 : f32
    %42 = vector.broadcast %cst_19 : f32 to vector<8x2xf32>
    %43 = arith.addf %42, %41 : vector<8x2xf32>
    %44 = arith.divf %42, %43 : vector<8x2xf32>
    %45 = arith.mulf %39, %44 : vector<8x2xf32>
    %46 = vector.extract_strided_slice %2 {offsets = [0, 2], sizes = [8, 1], strides = [1, 1]} : vector<8x16xf32> to vector<8x1xf32>
    %47 = vector.broadcast %46 : vector<8x1xf32> to vector<8x2xf32>
    %48 = arith.mulf %47, %45 : vector<8x2xf32>
    %49 = arith.addf %34, %48 : vector<8x2xf32>
    %c3 = arith.constant 3 : index
    %c0_20 = arith.constant 0 : index
    %c0_21 = arith.constant 0 : index
    %50 = vector.load %arg1[%c3, %c0_20, %c0_21] : memref<16x4x2xf32, #tpu.memory_space<vmem>>, vector<1x4x2xf32>
    %51 = vector.shape_cast %50 : vector<1x4x2xf32> to vector<4x2xf32>
    %cst_22 = arith.constant dense<0.000000e+00> : vector<8x2xf32>
    %52 = tpu.matmul %0, %51, %cst_22 {dimension_numbers = #tpu.dot_dimension_numbers<[1], [0], [0], [1], [0, 0, 1, 1], [], []>} : vector<8x4xf32>, vector<4x2xf32>, vector<8x2xf32> -> vector<8x2xf32>
    %53 = vector.broadcast %1 : vector<8x1xf32> to vector<8x2xf32>
    %54 = arith.addf %52, %53 : vector<8x2xf32>
    %55 = arith.negf %54 : vector<8x2xf32>
    %56 = math.exp %55 : vector<8x2xf32>
    %cst_23 = arith.constant 1.000000e+00 : f32
    %57 = vector.broadcast %cst_23 : f32 to vector<8x2xf32>
    %58 = arith.addf %57, %56 : vector<8x2xf32>
    %59 = arith.divf %57, %58 : vector<8x2xf32>
    %60 = arith.mulf %54, %59 : vector<8x2xf32>
    %61 = vector.extract_strided_slice %2 {offsets = [0, 3], sizes = [8, 1], strides = [1, 1]} : vector<8x16xf32> to vector<8x1xf32>
    %62 = vector.broadcast %61 : vector<8x1xf32> to vector<8x2xf32>
    %63 = arith.mulf %62, %60 : vector<8x2xf32>
    %64 = arith.addf %49, %63 : vector<8x2xf32>
    %c4 = arith.constant 4 : index
    %c0_24 = arith.constant 0 : index
    %c0_25 = arith.constant 0 : index
    %65 = vector.load %arg1[%c4, %c0_24, %c0_25] : memref<16x4x2xf32, #tpu.memory_space<vmem>>, vector<1x4x2xf32>
    %66 = vector.shape_cast %65 : vector<1x4x2xf32> to vector<4x2xf32>
    %cst_26 = arith.constant dense<0.000000e+00> : vector<8x2xf32>
    %67 = tpu.matmul %0, %66, %cst_26 {dimension_numbers = #tpu.dot_dimension_numbers<[1], [0], [0], [1], [0, 0, 1, 1], [], []>} : vector<8x4xf32>, vector<4x2xf32>, vector<8x2xf32> -> vector<8x2xf32>
    %68 = vector.broadcast %1 : vector<8x1xf32> to vector<8x2xf32>
    %69 = arith.addf %67, %68 : vector<8x2xf32>
    %70 = arith.negf %69 : vector<8x2xf32>
    %71 = math.exp %70 : vector<8x2xf32>
    %cst_27 = arith.constant 1.000000e+00 : f32
    %72 = vector.broadcast %cst_27 : f32 to vector<8x2xf32>
    %73 = arith.addf %72, %71 : vector<8x2xf32>
    %74 = arith.divf %72, %73 : vector<8x2xf32>
    %75 = arith.mulf %69, %74 : vector<8x2xf32>
    %76 = vector.extract_strided_slice %2 {offsets = [0, 4], sizes = [8, 1], strides = [1, 1]} : vector<8x16xf32> to vector<8x1xf32>
    %77 = vector.broadcast %76 : vector<8x1xf32> to vector<8x2xf32>
    %78 = arith.mulf %77, %75 : vector<8x2xf32>
    %79 = arith.addf %64, %78 : vector<8x2xf32>
    %c5 = arith.constant 5 : index
    %c0_28 = arith.constant 0 : index
    %c0_29 = arith.constant 0 : index
    %80 = vector.load %arg1[%c5, %c0_28, %c0_29] : memref<16x4x2xf32, #tpu.memory_space<vmem>>, vector<1x4x2xf32>
    %81 = vector.shape_cast %80 : vector<1x4x2xf32> to vector<4x2xf32>
    %cst_30 = arith.constant dense<0.000000e+00> : vector<8x2xf32>
    %82 = tpu.matmul %0, %81, %cst_30 {dimension_numbers = #tpu.dot_dimension_numbers<[1], [0], [0], [1], [0, 0, 1, 1], [], []>} : vector<8x4xf32>, vector<4x2xf32>, vector<8x2xf32> -> vector<8x2xf32>
    %83 = vector.broadcast %1 : vector<8x1xf32> to vector<8x2xf32>
    %84 = arith.addf %82, %83 : vector<8x2xf32>
    %85 = arith.negf %84 : vector<8x2xf32>
    %86 = math.exp %85 : vector<8x2xf32>
    %cst_31 = arith.constant 1.000000e+00 : f32
    %87 = vector.broadcast %cst_31 : f32 to vector<8x2xf32>
    %88 = arith.addf %87, %86 : vector<8x2xf32>
    %89 = arith.divf %87, %88 : vector<8x2xf32>
    %90 = arith.mulf %84, %89 : vector<8x2xf32>
    %91 = vector.extract_strided_slice %2 {offsets = [0, 5], sizes = [8, 1], strides = [1, 1]} : vector<8x16xf32> to vector<8x1xf32>
    %92 = vector.broadcast %91 : vector<8x1xf32> to vector<8x2xf32>
    %93 = arith.mulf %92, %90 : vector<8x2xf32>
    %94 = arith.addf %79, %93 : vector<8x2xf32>
    %c6 = arith.constant 6 : index
    %c0_32 = arith.constant 0 : index
    %c0_33 = arith.constant 0 : index
    %95 = vector.load %arg1[%c6, %c0_32, %c0_33] : memref<16x4x2xf32, #tpu.memory_space<vmem>>, vector<1x4x2xf32>
    %96 = vector.shape_cast %95 : vector<1x4x2xf32> to vector<4x2xf32>
    %cst_34 = arith.constant dense<0.000000e+00> : vector<8x2xf32>
    %97 = tpu.matmul %0, %96, %cst_34 {dimension_numbers = #tpu.dot_dimension_numbers<[1], [0], [0], [1], [0, 0, 1, 1], [], []>} : vector<8x4xf32>, vector<4x2xf32>, vector<8x2xf32> -> vector<8x2xf32>
    %98 = vector.broadcast %1 : vector<8x1xf32> to vector<8x2xf32>
    %99 = arith.addf %97, %98 : vector<8x2xf32>
    %100 = arith.negf %99 : vector<8x2xf32>
    %101 = math.exp %100 : vector<8x2xf32>
    %cst_35 = arith.constant 1.000000e+00 : f32
    %102 = vector.broadcast %cst_35 : f32 to vector<8x2xf32>
    %103 = arith.addf %102, %101 : vector<8x2xf32>
    %104 = arith.divf %102, %103 : vector<8x2xf32>
    %105 = arith.mulf %99, %104 : vector<8x2xf32>
    %106 = vector.extract_strided_slice %2 {offsets = [0, 6], sizes = [8, 1], strides = [1, 1]} : vector<8x16xf32> to vector<8x1xf32>
    %107 = vector.broadcast %106 : vector<8x1xf32> to vector<8x2xf32>
    %108 = arith.mulf %107, %105 : vector<8x2xf32>
    %109 = arith.addf %94, %108 : vector<8x2xf32>
    %c7 = arith.constant 7 : index
    %c0_36 = arith.constant 0 : index
    %c0_37 = arith.constant 0 : index
    %110 = vector.load %arg1[%c7, %c0_36, %c0_37] : memref<16x4x2xf32, #tpu.memory_space<vmem>>, vector<1x4x2xf32>
    %111 = vector.shape_cast %110 : vector<1x4x2xf32> to vector<4x2xf32>
    %cst_38 = arith.constant dense<0.000000e+00> : vector<8x2xf32>
    %112 = tpu.matmul %0, %111, %cst_38 {dimension_numbers = #tpu.dot_dimension_numbers<[1], [0], [0], [1], [0, 0, 1, 1], [], []>} : vector<8x4xf32>, vector<4x2xf32>, vector<8x2xf32> -> vector<8x2xf32>
    %113 = vector.broadcast %1 : vector<8x1xf32> to vector<8x2xf32>
    %114 = arith.addf %112, %113 : vector<8x2xf32>
    %115 = arith.negf %114 : vector<8x2xf32>
    %116 = math.exp %115 : vector<8x2xf32>
    %cst_39 = arith.constant 1.000000e+00 : f32
    %117 = vector.broadcast %cst_39 : f32 to vector<8x2xf32>
    %118 = arith.addf %117, %116 : vector<8x2xf32>
    %119 = arith.divf %117, %118 : vector<8x2xf32>
    %120 = arith.mulf %114, %119 : vector<8x2xf32>
    %121 = vector.extract_strided_slice %2 {offsets = [0, 7], sizes = [8, 1], strides = [1, 1]} : vector<8x16xf32> to vector<8x1xf32>
    %122 = vector.broadcast %121 : vector<8x1xf32> to vector<8x2xf32>
    %123 = arith.mulf %122, %120 : vector<8x2xf32>
    %124 = arith.addf %109, %123 : vector<8x2xf32>
    %c8 = arith.constant 8 : index
    %c0_40 = arith.constant 0 : index
    %c0_41 = arith.constant 0 : index
    %125 = vector.load %arg1[%c8, %c0_40, %c0_41] : memref<16x4x2xf32, #tpu.memory_space<vmem>>, vector<1x4x2xf32>
    %126 = vector.shape_cast %125 : vector<1x4x2xf32> to vector<4x2xf32>
    %cst_42 = arith.constant dense<0.000000e+00> : vector<8x2xf32>
    %127 = tpu.matmul %0, %126, %cst_42 {dimension_numbers = #tpu.dot_dimension_numbers<[1], [0], [0], [1], [0, 0, 1, 1], [], []>} : vector<8x4xf32>, vector<4x2xf32>, vector<8x2xf32> -> vector<8x2xf32>
    %128 = vector.broadcast %1 : vector<8x1xf32> to vector<8x2xf32>
    %129 = arith.addf %127, %128 : vector<8x2xf32>
    %130 = arith.negf %129 : vector<8x2xf32>
    %131 = math.exp %130 : vector<8x2xf32>
    %cst_43 = arith.constant 1.000000e+00 : f32
    %132 = vector.broadcast %cst_43 : f32 to vector<8x2xf32>
    %133 = arith.addf %132, %131 : vector<8x2xf32>
    %134 = arith.divf %132, %133 : vector<8x2xf32>
    %135 = arith.mulf %129, %134 : vector<8x2xf32>
    %136 = vector.extract_strided_slice %2 {offsets = [0, 8], sizes = [8, 1], strides = [1, 1]} : vector<8x16xf32> to vector<8x1xf32>
    %137 = vector.broadcast %136 : vector<8x1xf32> to vector<8x2xf32>
    %138 = arith.mulf %137, %135 : vector<8x2xf32>
    %139 = arith.addf %124, %138 : vector<8x2xf32>
    %c9 = arith.constant 9 : index
    %c0_44 = arith.constant 0 : index
    %c0_45 = arith.constant 0 : index
    %140 = vector.load %arg1[%c9, %c0_44, %c0_45] : memref<16x4x2xf32, #tpu.memory_space<vmem>>, vector<1x4x2xf32>
    %141 = vector.shape_cast %140 : vector<1x4x2xf32> to vector<4x2xf32>
    %cst_46 = arith.constant dense<0.000000e+00> : vector<8x2xf32>
    %142 = tpu.matmul %0, %141, %cst_46 {dimension_numbers = #tpu.dot_dimension_numbers<[1], [0], [0], [1], [0, 0, 1, 1], [], []>} : vector<8x4xf32>, vector<4x2xf32>, vector<8x2xf32> -> vector<8x2xf32>
    %143 = vector.broadcast %1 : vector<8x1xf32> to vector<8x2xf32>
    %144 = arith.addf %142, %143 : vector<8x2xf32>
    %145 = arith.negf %144 : vector<8x2xf32>
    %146 = math.exp %145 : vector<8x2xf32>
    %cst_47 = arith.constant 1.000000e+00 : f32
    %147 = vector.broadcast %cst_47 : f32 to vector<8x2xf32>
    %148 = arith.addf %147, %146 : vector<8x2xf32>
    %149 = arith.divf %147, %148 : vector<8x2xf32>
    %150 = arith.mulf %144, %149 : vector<8x2xf32>
    %151 = vector.extract_strided_slice %2 {offsets = [0, 9], sizes = [8, 1], strides = [1, 1]} : vector<8x16xf32> to vector<8x1xf32>
    %152 = vector.broadcast %151 : vector<8x1xf32> to vector<8x2xf32>
    %153 = arith.mulf %152, %150 : vector<8x2xf32>
    %154 = arith.addf %139, %153 : vector<8x2xf32>
    %c10 = arith.constant 10 : index
    %c0_48 = arith.constant 0 : index
    %c0_49 = arith.constant 0 : index
    %155 = vector.load %arg1[%c10, %c0_48, %c0_49] : memref<16x4x2xf32, #tpu.memory_space<vmem>>, vector<1x4x2xf32>
    %156 = vector.shape_cast %155 : vector<1x4x2xf32> to vector<4x2xf32>
    %cst_50 = arith.constant dense<0.000000e+00> : vector<8x2xf32>
    %157 = tpu.matmul %0, %156, %cst_50 {dimension_numbers = #tpu.dot_dimension_numbers<[1], [0], [0], [1], [0, 0, 1, 1], [], []>} : vector<8x4xf32>, vector<4x2xf32>, vector<8x2xf32> -> vector<8x2xf32>
    %158 = vector.broadcast %1 : vector<8x1xf32> to vector<8x2xf32>
    %159 = arith.addf %157, %158 : vector<8x2xf32>
    %160 = arith.negf %159 : vector<8x2xf32>
    %161 = math.exp %160 : vector<8x2xf32>
    %cst_51 = arith.constant 1.000000e+00 : f32
    %162 = vector.broadcast %cst_51 : f32 to vector<8x2xf32>
    %163 = arith.addf %162, %161 : vector<8x2xf32>
    %164 = arith.divf %162, %163 : vector<8x2xf32>
    %165 = arith.mulf %159, %164 : vector<8x2xf32>
    %166 = vector.extract_strided_slice %2 {offsets = [0, 10], sizes = [8, 1], strides = [1, 1]} : vector<8x16xf32> to vector<8x1xf32>
    %167 = vector.broadcast %166 : vector<8x1xf32> to vector<8x2xf32>
    %168 = arith.mulf %167, %165 : vector<8x2xf32>
    %169 = arith.addf %154, %168 : vector<8x2xf32>
    %c11 = arith.constant 11 : index
    %c0_52 = arith.constant 0 : index
    %c0_53 = arith.constant 0 : index
    %170 = vector.load %arg1[%c11, %c0_52, %c0_53] : memref<16x4x2xf32, #tpu.memory_space<vmem>>, vector<1x4x2xf32>
    %171 = vector.shape_cast %170 : vector<1x4x2xf32> to vector<4x2xf32>
    %cst_54 = arith.constant dense<0.000000e+00> : vector<8x2xf32>
    %172 = tpu.matmul %0, %171, %cst_54 {dimension_numbers = #tpu.dot_dimension_numbers<[1], [0], [0], [1], [0, 0, 1, 1], [], []>} : vector<8x4xf32>, vector<4x2xf32>, vector<8x2xf32> -> vector<8x2xf32>
    %173 = vector.broadcast %1 : vector<8x1xf32> to vector<8x2xf32>
    %174 = arith.addf %172, %173 : vector<8x2xf32>
    %175 = arith.negf %174 : vector<8x2xf32>
    %176 = math.exp %175 : vector<8x2xf32>
    %cst_55 = arith.constant 1.000000e+00 : f32
    %177 = vector.broadcast %cst_55 : f32 to vector<8x2xf32>
    %178 = arith.addf %177, %176 : vector<8x2xf32>
    %179 = arith.divf %177, %178 : vector<8x2xf32>
    %180 = arith.mulf %174, %179 : vector<8x2xf32>
    %181 = vector.extract_strided_slice %2 {offsets = [0, 11], sizes = [8, 1], strides = [1, 1]} : vector<8x16xf32> to vector<8x1xf32>
    %182 = vector.broadcast %181 : vector<8x1xf32> to vector<8x2xf32>
    %183 = arith.mulf %182, %180 : vector<8x2xf32>
    %184 = arith.addf %169, %183 : vector<8x2xf32>
    %c12 = arith.constant 12 : index
    %c0_56 = arith.constant 0 : index
    %c0_57 = arith.constant 0 : index
    %185 = vector.load %arg1[%c12, %c0_56, %c0_57] : memref<16x4x2xf32, #tpu.memory_space<vmem>>, vector<1x4x2xf32>
    %186 = vector.shape_cast %185 : vector<1x4x2xf32> to vector<4x2xf32>
    %cst_58 = arith.constant dense<0.000000e+00> : vector<8x2xf32>
    %187 = tpu.matmul %0, %186, %cst_58 {dimension_numbers = #tpu.dot_dimension_numbers<[1], [0], [0], [1], [0, 0, 1, 1], [], []>} : vector<8x4xf32>, vector<4x2xf32>, vector<8x2xf32> -> vector<8x2xf32>
    %188 = vector.broadcast %1 : vector<8x1xf32> to vector<8x2xf32>
    %189 = arith.addf %187, %188 : vector<8x2xf32>
    %190 = arith.negf %189 : vector<8x2xf32>
    %191 = math.exp %190 : vector<8x2xf32>
    %cst_59 = arith.constant 1.000000e+00 : f32
    %192 = vector.broadcast %cst_59 : f32 to vector<8x2xf32>
    %193 = arith.addf %192, %191 : vector<8x2xf32>
    %194 = arith.divf %192, %193 : vector<8x2xf32>
    %195 = arith.mulf %189, %194 : vector<8x2xf32>
    %196 = vector.extract_strided_slice %2 {offsets = [0, 12], sizes = [8, 1], strides = [1, 1]} : vector<8x16xf32> to vector<8x1xf32>
    %197 = vector.broadcast %196 : vector<8x1xf32> to vector<8x2xf32>
    %198 = arith.mulf %197, %195 : vector<8x2xf32>
    %199 = arith.addf %184, %198 : vector<8x2xf32>
    %c13 = arith.constant 13 : index
    %c0_60 = arith.constant 0 : index
    %c0_61 = arith.constant 0 : index
    %200 = vector.load %arg1[%c13, %c0_60, %c0_61] : memref<16x4x2xf32, #tpu.memory_space<vmem>>, vector<1x4x2xf32>
    %201 = vector.shape_cast %200 : vector<1x4x2xf32> to vector<4x2xf32>
    %cst_62 = arith.constant dense<0.000000e+00> : vector<8x2xf32>
    %202 = tpu.matmul %0, %201, %cst_62 {dimension_numbers = #tpu.dot_dimension_numbers<[1], [0], [0], [1], [0, 0, 1, 1], [], []>} : vector<8x4xf32>, vector<4x2xf32>, vector<8x2xf32> -> vector<8x2xf32>
    %203 = vector.broadcast %1 : vector<8x1xf32> to vector<8x2xf32>
    %204 = arith.addf %202, %203 : vector<8x2xf32>
    %205 = arith.negf %204 : vector<8x2xf32>
    %206 = math.exp %205 : vector<8x2xf32>
    %cst_63 = arith.constant 1.000000e+00 : f32
    %207 = vector.broadcast %cst_63 : f32 to vector<8x2xf32>
    %208 = arith.addf %207, %206 : vector<8x2xf32>
    %209 = arith.divf %207, %208 : vector<8x2xf32>
    %210 = arith.mulf %204, %209 : vector<8x2xf32>
    %211 = vector.extract_strided_slice %2 {offsets = [0, 13], sizes = [8, 1], strides = [1, 1]} : vector<8x16xf32> to vector<8x1xf32>
    %212 = vector.broadcast %211 : vector<8x1xf32> to vector<8x2xf32>
    %213 = arith.mulf %212, %210 : vector<8x2xf32>
    %214 = arith.addf %199, %213 : vector<8x2xf32>
    %c14 = arith.constant 14 : index
    %c0_64 = arith.constant 0 : index
    %c0_65 = arith.constant 0 : index
    %215 = vector.load %arg1[%c14, %c0_64, %c0_65] : memref<16x4x2xf32, #tpu.memory_space<vmem>>, vector<1x4x2xf32>
    %216 = vector.shape_cast %215 : vector<1x4x2xf32> to vector<4x2xf32>
    %cst_66 = arith.constant dense<0.000000e+00> : vector<8x2xf32>
    %217 = tpu.matmul %0, %216, %cst_66 {dimension_numbers = #tpu.dot_dimension_numbers<[1], [0], [0], [1], [0, 0, 1, 1], [], []>} : vector<8x4xf32>, vector<4x2xf32>, vector<8x2xf32> -> vector<8x2xf32>
    %218 = vector.broadcast %1 : vector<8x1xf32> to vector<8x2xf32>
    %219 = arith.addf %217, %218 : vector<8x2xf32>
    %220 = arith.negf %219 : vector<8x2xf32>
    %221 = math.exp %220 : vector<8x2xf32>
    %cst_67 = arith.constant 1.000000e+00 : f32
    %222 = vector.broadcast %cst_67 : f32 to vector<8x2xf32>
    %223 = arith.addf %222, %221 : vector<8x2xf32>
    %224 = arith.divf %222, %223 : vector<8x2xf32>
    %225 = arith.mulf %219, %224 : vector<8x2xf32>
    %226 = vector.extract_strided_slice %2 {offsets = [0, 14], sizes = [8, 1], strides = [1, 1]} : vector<8x16xf32> to vector<8x1xf32>
    %227 = vector.broadcast %226 : vector<8x1xf32> to vector<8x2xf32>
    %228 = arith.mulf %227, %225 : vector<8x2xf32>
    %229 = arith.addf %214, %228 : vector<8x2xf32>
    %c15 = arith.constant 15 : index
    %c0_68 = arith.constant 0 : index
    %c0_69 = arith.constant 0 : index
    %230 = vector.load %arg1[%c15, %c0_68, %c0_69] : memref<16x4x2xf32, #tpu.memory_space<vmem>>, vector<1x4x2xf32>
    %231 = vector.shape_cast %230 : vector<1x4x2xf32> to vector<4x2xf32>
    %cst_70 = arith.constant dense<0.000000e+00> : vector<8x2xf32>
    %232 = tpu.matmul %0, %231, %cst_70 {dimension_numbers = #tpu.dot_dimension_numbers<[1], [0], [0], [1], [0, 0, 1, 1], [], []>} : vector<8x4xf32>, vector<4x2xf32>, vector<8x2xf32> -> vector<8x2xf32>
    %233 = vector.broadcast %1 : vector<8x1xf32> to vector<8x2xf32>
    %234 = arith.addf %232, %233 : vector<8x2xf32>
    %235 = arith.negf %234 : vector<8x2xf32>
    %236 = math.exp %235 : vector<8x2xf32>
    %cst_71 = arith.constant 1.000000e+00 : f32
    %237 = vector.broadcast %cst_71 : f32 to vector<8x2xf32>
    %238 = arith.addf %237, %236 : vector<8x2xf32>
    %239 = arith.divf %237, %238 : vector<8x2xf32>
    %240 = arith.mulf %234, %239 : vector<8x2xf32>
    %241 = vector.extract_strided_slice %2 {offsets = [0, 15], sizes = [8, 1], strides = [1, 1]} : vector<8x16xf32> to vector<8x1xf32>
    %242 = vector.broadcast %241 : vector<8x1xf32> to vector<8x2xf32>
    %243 = arith.mulf %242, %240 : vector<8x2xf32>
    %244 = arith.addf %229, %243 : vector<8x2xf32>
    %245 = vector.broadcast %3 : vector<8x1xf32> to vector<8x2xf32>
    %246 = arith.addf %244, %245 : vector<8x2xf32>
    %247 = arith.negf %246 : vector<8x2xf32>
    %248 = math.exp %247 : vector<8x2xf32>
    %cst_72 = arith.constant 1.000000e+00 : f32
    %249 = vector.broadcast %cst_72 : f32 to vector<8x2xf32>
    %250 = arith.addf %249, %248 : vector<8x2xf32>
    %251 = arith.divf %249, %250 : vector<8x2xf32>
    %252 = arith.mulf %246, %251 : vector<8x2xf32>
    %c0_73 = arith.constant 0 : index
    %c0_74 = arith.constant 0 : index
    %253 = vector.load %arg6[%c0_73, %c0_74] : memref<8x2xf32, #tpu.memory_space<vmem>>, vector<8x2xf32>
    tpu.vector_store %arg6[%c0_73, %c0_74], %252 {strides = array<i32>} : memref<8x2xf32, #tpu.memory_space<vmem>>, vector<8x2xf32>,
    return
  }
  func.func @transform_0(%arg0: i32) -> (i32, i32, i32) {
    %c0_i32 = arith.constant 0 : i32
    %c0_i32_0 = arith.constant 0 : i32
    %c0_i32_1 = arith.constant 0 : i32
    return %c0_i32, %c0_i32_0, %arg0 : i32, i32, i32
  }
  func.func @transform_1(%arg0: i32) -> (i32, i32) {
    %c0_i32 = arith.constant 0 : i32
    %c0_i32_0 = arith.constant 0 : i32
    %c0_i32_1 = arith.constant 0 : i32
    return %c0_i32, %c0_i32_0 : i32, i32
  }
  func.func @transform_2(%arg0: i32) -> (i32, i32) {
    %c0_i32 = arith.constant 0 : i32
    %c0_i32_0 = arith.constant 0 : i32
    %c0_i32_1 = arith.constant 0 : i32
    return %c0_i32, %c0_i32_0 : i32, i32
  }
  func.func @transform_3(%arg0: i32) -> (i32, i32) {
    %c0_i32 = arith.constant 0 : i32
    %c0_i32_0 = arith.constant 0 : i32
    %c0_i32_1 = arith.constant 0 : i32
    return %c0_i32, %c0_i32_0 : i32, i32
  }
  func.func @transform_4(%arg0: i32) -> (i32, i32) {
    %c0_i32 = arith.constant 0 : i32
    %c0_i32_0 = arith.constant 0 : i32
    %c0_i32_1 = arith.constant 0 : i32
    return %c0_i32, %c0_i32_0 : i32, i32
  }
  func.func @transform_5(%arg0: i32) -> (i32, i32) {
    %c0_i32 = arith.constant 0 : i32
    %c0_i32_0 = arith.constant 0 : i32
    return %c0_i32, %arg0 : i32, i32
  }
}

</mosaic_0001>

<bundles_post_ra>
// kernel: tpu_custom_call.1
= control target key start
LH: loop header
LB: loop body
LE: loop exit
PB: predicated region body
PF: predicated region fallthrough
CT: control target
= control target key end

     0   :  { %vm34_vm0 = vcmask 1043456   ;;  %vm30_vm1 = vcmask 31744   ;;  %v1048_v3 = vmov 0   ;;  %v1049_v4 = vmov 1   ;;  %s1575_s0 = inlined_call_operand.vmem [shape: f32[16,4,2], index: 0, kind: input, shape index: {}]   ;;  %s1576_s1 = inlined_call_operand.vmem [shape: f32[8,4], index: 1, kind: input, shape index: {}]   ;;  %s1577_s2 = inlined_call_operand.vmem [shape: f32[8,1], index: 2, kind: input, shape index: {}]   ;;  %s1578_s3 = inlined_call_operand.vmem [shape: f32[8,16], index: 3, kind: input, shape index: {}]   ;;  %s1579_s4 = inlined_call_operand.vmem [shape: f32[8,1], index: 4, kind: input, shape index: {}]   ;;  %s1580_s5 = inlined_call_operand.vmem [shape: f32[8,2], index: 5, kind: output, shape index: {}]  }
   0x1   :  { %v24_v0 = vld [vmem:[%s1575_s0] sm:$0xf]  ;;  %v885_v1 = vld [vmem:[%s1575_s0 + $0x4] sm:$0xf]  ;;  %v889_v2 = vld [vmem:[%s1575_s0 + $0x8] sm:$0xf]  ;;  %962 = vset.pattern.permute.xlu0 %v1048_v3  ;;  %963 = vset.pattern.permute.xlu1 %v1049_v4 }
   0x2   :  { %882 = vmatpush.msk.msra.mxu0 %vm34_vm0, %v24_v0  ;;  %886 = vmatpush.msk.msra.mxu1 %vm34_vm0, %v885_v1  ;;  %v893_v5 = vld [vmem:[%s1575_s0 + $0xc] sm:$0xf]  ;;  %v1112_v6 = vld [vmem:[%s1576_s1] sm:$0xff]  ;;  %v905_v7 = vld [vmem:[%s1575_s0 + $0x18] sm:$0xf]  ;;  %v1050_v19 = vmov 3  }
   0x3   :  { %890 = vmatpush.msk.msra.mxu2 %vm34_vm0, %v889_v2  ;;  %894 = vmatpush.msk.msra.mxu3 %vm34_vm0, %v893_v5  ;;  %v897_v8 = vld [vmem:[%s1575_s0 + $0x10] sm:$0xf]  ;;  %v909_v9 = vld [vmem:[%s1575_s0 + $0x1c] sm:$0xf]  ;;  %v901_v10 = vld [vmem:[%s1575_s0 + $0x14] sm:$0xf] }
   0x4   :  { %883 = vmatmul.msk.f32.vlgmr.msra.gmra.mxu0 %vm30_vm1, %v1112_v6  ;;  %887 = vmatmul.msk.f32.vlgmr.msra.gmra.mxu1 %vm30_vm1, %v1112_v6  ;;  %v21_v11 = vld [vmem:[%s1577_s2] sm:$0xff]  ;;  %v921_v12 = vld [vmem:[%s1575_s0 + $0x28] sm:$0xf]  ;;  %v925_v14 = vld [vmem:[%s1575_s0 + $0x2c] sm:$0xf]  ;;  %v1051_v22 = vmov 2  }
   0x5   :  { %891 = vmatmul.msk.f32.vlgmr.msra.gmra.mxu2 %vm30_vm1, %v1112_v6  ;;  %895 = vmatmul.msk.f32.vlgmr.msra.gmra.mxu3 %vm30_vm1, %v1112_v6  ;;  %v913_v13 = vld [vmem:[%s1575_s0 + $0x20] sm:$0xf]  ;;  %v917_v15 = vld [vmem:[%s1575_s0 + $0x24] sm:$0xf]  ;;  %v937_v17 = vld [vmem:[%s1575_s0 + $0x38] sm:$0xf] }
   0x6   :  { %906 = vmatpush.msk.msrb.mxu2 %vm34_vm0, %v905_v7  ;;  %898 = vmatpush.msk.msrb.mxu0 %vm34_vm0, %v897_v8  ;;  %v1161_v16 = vld [vmem:[%s1578_s3] sm:$0xff]  ;;  %v929_v18 = vld [vmem:[%s1575_s0 + $0x30] sm:$0xf]  ;;  %v941_v20 = vld [vmem:[%s1575_s0 + $0x3c] sm:$0xf]  ;;  %v1052_v23 = vmov 5  }
   0x7   :  { %910 = vmatpush.msk.msrb.mxu3 %vm34_vm0, %v909_v9  ;;  %902 = vmatpush.msk.msrb.mxu1 %vm34_vm0, %v901_v10  ;;  %v933_v21 = vld [vmem:[%s1575_s0 + $0x34] sm:$0xf]  ;;  %v1053_v24 = vmov 4   ;;  %v1054_v25 = vmov 6   ;;  %v1055_v26 = vmov 10   ;;  %v1056_v27 = vmov 7  }
   0x8   :  { %27 = vperm.xlu0 %962, %v21_v11   ;;  %922 = vmatpush.msk.msra.mxu2 %vm34_vm0, %v921_v12  ;;  %v1057_v28 = vmov 8   ;;  %v1058_v29 = vmov 15   ;;  %v1059_v30 = vmov 9   ;;  %v1060_v31 = vmov 11   ;;  %v23_v35 = vld [vmem:[%s1579_s4] sm:$0xff] }
   0x9   :  { %914 = vmatpush.msk.msra.mxu0 %vm34_vm0, %v913_v13  ;;  %926 = vmatpush.msk.msra.mxu3 %vm34_vm0, %v925_v14  ;;  %v1061_v32 = vmov 12   ;;  %v1062_v33 = vmov 13   ;;  %v1063_v34 = vmov 14  }
   0xa   :  { %918 = vmatpush.msk.msra.mxu1 %vm34_vm0, %v917_v15  ;;  %131 = vperm.xlu1 %963, %v1161_v16  }
   0xb   :  { %965 = vset.pattern.permute.xlu2 %v1050_v19 }
   0xc   :  { %899 = vmatmul.msk.f32.vlgmr.msrb.gmra.mxu0 %vm30_vm1, %v1112_v6  ;;  %903 = vmatmul.msk.f32.vlgmr.msrb.gmra.mxu1 %vm30_vm1, %v1112_v6 }
   0xd   :  { %907 = vmatmul.msk.f32.vlgmr.msrb.gmra.mxu2 %vm30_vm1, %v1112_v6  ;;  %911 = vmatmul.msk.f32.vlgmr.msrb.gmra.mxu3 %vm30_vm1, %v1112_v6 }
   0xe   :  { %938 = vmatpush.msk.msrb.mxu2 %vm34_vm0, %v937_v17  ;;  %930 = vmatpush.msk.msrb.mxu0 %vm34_vm0, %v929_v18 }
   0xf   :  { %942 = vmatpush.msk.msrb.mxu3 %vm34_vm0, %v941_v20  ;;  %934 = vmatpush.msk.msrb.mxu1 %vm34_vm0, %v933_v21 }
  0x10   :  { %80 = vperm.xlu0 %962, %v1161_v16   ;;  %233 = vperm.xlu2 %965, %v1161_v16  }
  0x12   :  { %964 = vset.pattern.permute.xlu1 %v1051_v22 }
  0x13   :  { %182 = vperm.xlu1 %964, %v1161_v16  }
  0x14   :  { %915 = vmatmul.msk.f32.vlgmr.msra.gmra.mxu0 %vm30_vm1, %v1112_v6  ;;  %919 = vmatmul.msk.f32.vlgmr.msra.gmra.mxu1 %vm30_vm1, %v1112_v6 }
  0x15   :  { %923 = vmatmul.msk.f32.vlgmr.msra.gmra.mxu2 %vm30_vm1, %v1112_v6  ;;  %927 = vmatmul.msk.f32.vlgmr.msra.gmra.mxu3 %vm30_vm1, %v1112_v6 }
  0x18   :  { %967 = vset.pattern.permute.xlu0 %v1052_v23  ;;  %966 = vset.pattern.permute.xlu2 %v1053_v24 }
  0x19   :  { %335 = vperm.xlu0 %967, %v1161_v16   ;;  %284 = vperm.xlu2 %966, %v1161_v16  }
  0x1b   :  { %968 = vset.pattern.permute.xlu1 %v1054_v25 }
  0x1c   :  { %931 = vmatmul.msk.f32.vlgmr.msrb.gmra.mxu0 %vm30_vm1, %v1112_v6  ;;  %935 = vmatmul.msk.f32.vlgmr.msrb.gmra.mxu1 %vm30_vm1, %v1112_v6 }
  0x1d   :  { %939 = vmatmul.msk.f32.vlgmr.msrb.gmra.mxu2 %vm30_vm1, %v1112_v6  ;;  %943 = vmatmul.msk.f32.vlgmr.msrb.gmra.mxu3 %vm30_vm1, %v1112_v6 }
  0x1e   :  { %386 = vperm.xlu1 %968, %v1161_v16  }
  0x21   :  { %972 = vset.pattern.permute.xlu0 %v1055_v26  ;;  %969 = vset.pattern.permute.xlu2 %v1056_v27 }
  0x22   :  { %590 = vperm.xlu0 %972, %v1161_v16   ;;  %437 = vperm.xlu2 %969, %v1161_v16  }
  0x26   :  { %970 = vset.pattern.permute.xlu1 %v1057_v28 }
  0x27   :  { %488 = vperm.xlu1 %970, %v1161_v16  }
  0x2a   :  { %977 = vset.pattern.permute.xlu0 %v1058_v29  ;;  %971 = vset.pattern.permute.xlu2 %v1059_v30 }
  0x2b   :  { %845 = vperm.xlu0 %977, %v1161_v16   ;;  %539 = vperm.xlu2 %971, %v1161_v16  }
  0x2f   :  { %973 = vset.pattern.permute.xlu1 %v1060_v31 }
  0x30   :  { %641 = vperm.xlu1 %973, %v1161_v16  }
  0x33   :  { %974 = vset.pattern.permute.xlu2 %v1061_v32  ;;  %979 = vset.pattern.permute.xlu0 %v1048_v3 }
  0x34   :  { %692 = vperm.xlu2 %974, %v1161_v16  }
  0x38   :  { %975 = vset.pattern.permute.xlu1 %v1062_v33 }
  0x39   :  { %743 = vperm.xlu1 %975, %v1161_v16  }
  0x3c   :  { %976 = vset.pattern.permute.xlu2 %v1063_v34 }
  0x3d   :  { %794 = vperm.xlu2 %976, %v1161_v16  }
  0x41   :  { %978 = vset.pattern.permute.xlu1 %v1048_v3 }
  0x42   :  { %852 = vperm.xlu1 %978, %v23_v35  }
  0x7a   :  { %v1225_v36 = vpop.permute.xlu0 %27 }
  0x81   :  { %v55_v37 = vpop.f32.mrf.mxu0  ;;  %v107_v38 = vpop.f32.mrf.mxu1 }
  0x82   :  { %v1228_v39 = vadd.f32 %v55_v37, %v1225_v36  ;;  %v1231_v40 = vadd.f32 %v107_v38, %v1225_v36 }
  0x84   :  { %v884_v41 = vmul.f32 -1.442695, %v1228_v39  ;;  %v888_v42 = vmul.f32 -1.442695, %v1231_v40 }
  0x86   :  { %980 = vpow2.f32 %v884_v41 }
  0x87   :  { %982 = vpow2.f32 %v888_v42 }
  0x88   :  { %v158_v43 = vpop.f32.mrf.mxu2  ;;  %v209_v44 = vpop.f32.mrf.mxu3 }
  0x89   :  { %v1236_v45 = vadd.f32 %v158_v43, %v1225_v36  ;;  %v1239_v46 = vadd.f32 %v209_v44, %v1225_v36  ;;  %v260_v47 = vpop.f32.mrf.mxu0  ;;  %v311_v48 = vpop.f32.mrf.mxu1 }
  0x8a   :  { %v1242_v49 = vadd.f32 %v260_v47, %v1225_v36  ;;  %v1245_v50 = vadd.f32 %v311_v48, %v1225_v36 }
  0x8b   :  { %v892_v51 = vmul.f32 -1.442695, %v1236_v45  ;;  %v896_v52 = vmul.f32 -1.442695, %v1239_v46 }
  0x8c   :  { %v981_v53 = vpop.eup %980  ;;  %v900_v56 = vmul.f32 -1.442695, %v1242_v49  ;;  %v904_v58 = vmul.f32 -1.442695, %v1245_v50 }
  0x8d   :  { %v983_v54 = vpop.eup %982  ;;  %v1249_v55 = vadd.f32 1.0, %v981_v53  ;;  %984 = vpow2.f32 %v892_v51 }
  0x8e   :  { %v1252_v57 = vadd.f32 1.0, %v983_v54  ;;  %986 = vpow2.f32 %v896_v52 }
  0x8f   :  { %988 = vrcp.f32 %v1249_v55  ;;  %v71_v0 = vand.u32 2147483647, %v1249_v55  ;;  %v73_v1 = vand.u32 2147483648, %v1249_v55  ;;  %vm67_vm2 = vweird.f32 %v1249_v55 }
  0x90   :  { %990 = vrcp.f32 %v1252_v57  ;;  %v362_v59 = vpop.f32.mrf.mxu2  ;;  %v413_v60 = vpop.f32.mrf.mxu3  ;;  %v123_v4 = vand.u32 2147483647, %v1252_v57  ;;  %v125_v5 = vand.u32 2147483648, %v1252_v57  ;;  %vm119_vm3 = vweird.f32 %v1252_v57 }
  0x91   :  { %992 = vpow2.f32 %v900_v56  ;;  %v1258_v61 = vadd.f32 %v362_v59, %v1225_v36  ;;  %v464_v62 = vpop.f32.mrf.mxu0  ;;  %v515_v63 = vpop.f32.mrf.mxu1  ;;  %v1263_v2 = vadd.f32 %v413_v60, %v1225_v36  ;;  %vm1283_vm4 = vcmp.eq.f32.partialorder %v71_v0, 8.507059e+37 }
  0x92   :  { %994 = vpow2.f32 %v904_v58  ;;  %v1269_v7 = vadd.f32 %v464_v62, %v1225_v36  ;;  %v1276_v11 = vadd.f32 %v515_v63, %v1225_v36  ;;  %v74_v18 = vor.u32 1.1754944e-38, %v73_v1  ;;  %v132_v0 = vpop.permute.xlu1 %131 }
  0x93   :  { %v985_v3 = vpop.eup %984  ;;  %v908_v6 = vmul.f32 -1.442695, %v1258_v61  ;;  %v912_v10 = vmul.f32 -1.442695, %v1263_v2  ;;  %vm1290_vm5 = vcmp.eq.f32.partialorder %v123_v4, 8.507059e+37  ;;  %v126_v22 = vor.u32 1.1754944e-38, %v125_v5 }
  0x94   :  { %v987_v8 = vpop.eup %986  ;;  %v1272_v9 = vadd.f32 1.0, %v985_v3  ;;  %v916_v14 = vmul.f32 -1.442695, %v1269_v7  ;;  %v920_v26 = vmul.f32 -1.442695, %v1276_v11 }
  0x95   :  { %v989_v12 = vpop.eup %988  ;;  %v1278_v13 = vadd.f32 1.0, %v987_v8  ;;  %996 = vpow2.f32 %v908_v6 }
  0x96   :  { %v991_v15 = vpop.eup %990  ;;  %v63_v16 = vmul.f32 %v989_v12, %v1249_v55  ;;  %998 = vrcp.f32 %v1272_v9  ;;  %vm68_vm6 = vweird.f32 %v989_v12  ;;  %vm170_vm10 = vweird.f32 %v1272_v9 }
  0x97   :  { %v993_v19 = vpop.eup %992  ;;  %1000 = vrcp.f32 %v1278_v13  ;;  %v115_v20 = vmul.f32 %v991_v15, %v1252_v57  ;;  %v225_v32 = vand.u32 2147483647, %v1278_v13  ;;  %v227_v33 = vand.u32 2147483648, %v1278_v13  ;;  %vm69_vm9 = vmor %vm67_vm2, %vm68_vm6 }
  0x98   :  { %v995_v23 = vpop.eup %994  ;;  %v64_v24 = vsub.f32 1.0, %v63_v16  ;;  %v1294_v25 = vadd.f32 1.0, %v993_v19  ;;  %1002 = vpow2.f32 %v912_v10  ;;  %v566_v27 = vpop.f32.mrf.mxu2  ;;  %vm120_vm7 = vweird.f32 %v991_v15 }
  0x99   :  { %v617_v28 = vpop.f32.mrf.mxu3  ;;  %v1297_v29 = vadd.f32 1.0, %v995_v23  ;;  %v116_v30 = vsub.f32 1.0, %v115_v20  ;;  %1004 = vpow2.f32 %v916_v14  ;;  %v1302_v34 = vadd.f32 %v566_v27, %v1225_v36  ;;  %vm121_vm11 = vmor %vm119_vm3, %vm120_vm7  ;;  %v719_v17 = vpop.f32.mrf.mxu1 }
  0x9a   :  { %v65_v31 = vmul.f32 %v989_v12, %v64_v24  ;;  %1006 = vrcp.f32 %v1294_v25  ;;  %v1306_v38 = vadd.f32 %v617_v28, %v1225_v36  ;;  %vm221_vm8 = vweird.f32 %v1278_v13 }
  0x9b   :  { %v997_v35 = vpop.eup %996  ;;  %v117_v37 = vmul.f32 %v991_v15, %v116_v30  ;;  %1008 = vpow2.f32 %v920_v26  ;;  %v924_v43 = vmul.f32 -1.442695, %v1302_v34  ;;  %vm1325_vm12 = vcmp.eq.f32.partialorder %v225_v32, 8.507059e+37 }
  0x9c   :  { %v1308_v41 = vpop.eup %998  ;;  %v66_v42 = vadd.f32 %v989_v12, %v65_v31  ;;  %1010 = vrcp.f32 %v1297_v29  ;;  %v1316_v48 = vadd.f32 1.0, %v997_v35  ;;  %v228_v56 = vor.u32 1.1754944e-38, %v227_v33  ;;  %v234_v35 = vpop.permute.xlu2 %233 }
  0x9d   :  { %v1001_v44 = vpop.eup %1000  ;;  %v118_v47 = vadd.f32 %v991_v15, %v117_v37  ;;  %v166_v51 = vmul.f32 %v1308_v41, %v1272_v9  ;;  %v928_v58 = vmul.f32 -1.442695, %v1306_v38  ;;  %1012 = vpow2.f32 %v924_v43 }
  0x9e   :  { %v1003_v52 = vpop.eup %1002  ;;  %v70_v53 = vsel %vm69_vm9, %v989_v12, %v66_v42  ;;  %v217_v54 = vmul.f32 %v1001_v44, %v1278_v13  ;;  %1014 = vrcp.f32 %v1316_v48  ;;  %v174_v10 = vand.u32 2147483647, %v1272_v9  ;;  %v668_v12 = vpop.f32.mrf.mxu0 }
  0x9f   :  { %v1005_v59 = vpop.eup %1004  ;;  %v75_v60 = vsel %vm1283_vm4, %v74_v18, %v70_v53  ;;  %v122_v62 = vsel %vm121_vm11, %v991_v15, %v118_v47  ;;  %v1332_v63 = vadd.f32 1.0, %v1003_v52  ;;  %v167_v8 = vsub.f32 1.0, %v166_v51  ;;  %v81_v15 = vpop.permute.xlu0 %80 }
  0xa0   :  { %v77_v57 = vmul.f32 %v75_v60, %v1228_v39  ;;  %v127_v1 = vsel %vm1290_vm5, %v126_v22, %v122_v62  ;;  %v1337_v3 = vadd.f32 1.0, %v1005_v59  ;;  %v218_v4 = vsub.f32 1.0, %v217_v54  ;;  %v1339_v5 = vpop.eup %1006  ;;  %v770_v53 = vpop.f32.mrf.mxu2 }
  0xa1   :  { %v129_v6 = vmul.f32 %v127_v1, %v1231_v40  ;;  %v1009_v14 = vpop.eup %1008  ;;  %1016 = vrcp.f32 %v1332_v63  ;;  %vm222_vm13 = vweird.f32 %v1001_v44  ;;  %v176_v16 = vand.u32 2147483648, %v1272_v9  ;;  %v183_v60 = vpop.permute.xlu1 %182 }
  0xa2   :  { %v219_v39 = vmul.f32 %v1001_v44, %v218_v4  ;;  %v1346_v18 = vpop.eup %1010  ;;  %v83_v19 = vmul.f32 %v81_v15, %v77_v57  ;;  %1018 = vrcp.f32 %v1337_v3  ;;  %v168_v40 = vmul.f32 %v1308_v41, %v167_v8  ;;  %vm223_vm15 = vmor %vm221_vm8, %vm222_vm13 }
  0xa3   :  { %vm171_vm14 = vweird.f32 %v1308_v41  ;;  %v1351_v20 = vadd.f32 1.0, %v1009_v14  ;;  %1020 = vpow2.f32 %v928_v58  ;;  %v1354_v22 = vadd.f32 %v668_v12, %v1225_v36  ;;  %v1013_v23 = vpop.eup %1012  ;;  %v821_v58 = vpop.f32.mrf.mxu3 }
  0xa4   :  { %v220_v21 = vadd.f32 %v1001_v44, %v219_v39  ;;  %v134_v24 = vmul.f32 %v132_v0, %v129_v6  ;;  %v169_v26 = vadd.f32 %v1308_v41, %v168_v40  ;;  %vm1359_vm0 = vcmp.eq.f32.partialorder %v174_v10, 8.507059e+37  ;;  %vm172_vm1 = vmor %vm170_vm10, %vm171_vm14  ;;  %v1371_v33 = vpop.eup %1014 }
  0xa5   :  { %v1364_v28 = vadd.f32 %v719_v17, %v1225_v36  ;;  %v177_v31 = vor.u32 1.1754944e-38, %v176_v16  ;;  %v932_v32 = vmul.f32 -1.442695, %v1354_v22  ;;  %v268_v13 = vmul.f32 %v1339_v5, %v1294_v25 }
  0xa6   :  { %v224_v30 = vsel %vm223_vm15, %v1001_v44, %v220_v21  ;;  %v1375_v42 = vadd.f32 1.0, %v1013_v23  ;;  %v173_v43 = vsel %vm172_vm1, %v1308_v41, %v169_v26  ;;  %1022 = vrcp.f32 %v1351_v20 }
  0xa7   :  { %v229_v37 = vsel %vm1325_vm12, %v228_v56, %v224_v30  ;;  %v936_v44 = vmul.f32 -1.442695, %v1364_v28  ;;  %v1379_v9 = vpop.eup %1016  ;;  %v178_v51 = vsel %vm1359_vm0, %v177_v31, %v173_v43  ;;  %v269_v52 = vsub.f32 1.0, %v268_v13 }
  0xa8   :  { %v231_v47 = vmul.f32 %v229_v37, %v1239_v46  ;;  %v1385_v54 = vpop.eup %1018  ;;  %v135_v55 = vadd.f32 %v134_v24, %v83_v19  ;;  %v180_v56 = vmul.f32 %v178_v51, %v1236_v45  ;;  %1024 = vpow2.f32 %v932_v32 }
  0xa9   :  { %v276_v41 = vand.u32 2147483647, %v1294_v25  ;;  %v1021_v59 = vpop.eup %1020  ;;  %1026 = vpow2.f32 %v936_v44  ;;  %v270_v62 = vmul.f32 %v1339_v5, %v269_v52  ;;  %vm272_vm2 = vweird.f32 %v1294_v25 }
  0xaa   :  { %vm273_vm3 = vweird.f32 %v1339_v5  ;;  %1028 = vrcp.f32 %v1375_v42  ;;  %v185_v46 = vmul.f32 %v183_v60, %v180_v56  ;;  %v278_v57 = vand.u32 2147483648, %v1294_v25 }
  0xab   :  { %v1395_v45 = vadd.f32 %v770_v53, %v1225_v36  ;;  %v236_v0 = vmul.f32 %v234_v35, %v231_v47  ;;  %v271_v1 = vadd.f32 %v1339_v5, %v270_v62  ;;  %v1399_v4 = vadd.f32 %v821_v58, %v1225_v36  ;;  %vm274_vm4 = vmor %vm272_vm2, %vm273_vm3 }
  0xac   :  { %v370_v6 = vmul.f32 %v1371_v33, %v1316_v48  ;;  %v1403_v8 = vadd.f32 1.0, %v1021_v59  ;;  %vm277_vm5 = vcmp.eq.f32.partialorder %v276_v41, 8.507059e+37  ;;  %v279_v10 = vor.u32 1.1754944e-38, %v278_v57  ;;  %v1406_v25 = vpop.eup %1022 }
  0xad   :  { %v940_v12 = vmul.f32 -1.442695, %v1395_v45  ;;  %v186_v14 = vadd.f32 %v185_v46, %v135_v55  ;;  %v275_v15 = vsel %vm274_vm4, %v1339_v5, %v271_v1  ;;  %v944_v39 = vmul.f32 -1.442695, %v1399_v4  ;;  %v285_v5 = vpop.permute.xlu2 %284  ;;  %v387_v46 = vpop.permute.xlu1 %386 }
  0xae   :  { %v371_v16 = vsub.f32 1.0, %v370_v6  ;;  %v1025_v36 = vpop.eup %1024  ;;  %v280_v17 = vsel %vm277_vm5, %v279_v10, %v275_v15  ;;  %vm375_vm6 = vweird.f32 %v1371_v33  ;;  %v378_v19 = vand.u32 2147483647, %v1316_v48 }
  0xaf   :  { %1030 = vpow2.f32 %v940_v12  ;;  %v1027_v40 = vpop.eup %1026  ;;  %v1412_v21 = vadd.f32 1.0, %v1025_v36  ;;  %v282_v23 = vmul.f32 %v280_v17, %v1242_v49  ;;  %v380_v27 = vand.u32 2147483648, %v1316_v48 }
  0xb0   :  { %1032 = vpow2.f32 %v944_v39  ;;  %v372_v24 = vmul.f32 %v1371_v33, %v371_v16  ;;  %v1416_v26 = vpop.eup %1028  ;;  %v421_v30 = vmul.f32 %v1379_v9, %v1332_v63  ;;  %v1422_v31 = vadd.f32 1.0, %v1027_v40 }
  0xb1   :  { %1034 = vrcp.f32 %v1403_v8  ;;  %v237_v32 = vadd.f32 %v236_v0, %v186_v14  ;;  %vm374_vm7 = vweird.f32 %v1316_v48  ;;  %vm379_vm9 = vcmp.eq.f32.partialorder %v378_v19, 8.507059e+37 }
  0xb2   :  { %v373_v13 = vadd.f32 %v1371_v33, %v372_v24  ;;  %1036 = vrcp.f32 %v1412_v21  ;;  %vm376_vm8 = vmor %vm374_vm7, %vm375_vm6  ;;  %v381_v49 = vor.u32 1.1754944e-38, %v380_v27  ;;  %v422_v35 = vsub.f32 1.0, %v421_v30 }
  0xb3   :  { %v287_v37 = vmul.f32 %v285_v5, %v282_v23  ;;  %v429_v44 = vand.u32 2147483647, %v1332_v63  ;;  %v431_v47 = vand.u32 2147483648, %v1332_v63  ;;  %vm426_vm10 = vweird.f32 %v1379_v9 }
  0xb4   :  { %v377_v43 = vsel %vm376_vm8, %v1371_v33, %v373_v13  ;;  %v423_v53 = vmul.f32 %v1379_v9, %v422_v35  ;;  %v472_v48 = vmul.f32 %v1385_v54, %v1337_v3  ;;  %1038 = vrcp.f32 %v1422_v31 }
  0xb5   :  { %v1031_v51 = vpop.eup %1030  ;;  %v382_v52 = vsel %vm379_vm9, %v381_v49, %v377_v43  ;;  %vm425_vm11 = vweird.f32 %v1332_v63  ;;  %v1443_v58 = vadd.f32 %v287_v37, %v237_v32  ;;  %vm430_vm13 = vcmp.eq.f32.partialorder %v429_v44, 8.507059e+37  ;;  %v438_v15 = vpop.permute.xlu2 %437 }
  0xb6   :  { %v1033_v55 = vpop.eup %1032  ;;  %v1437_v56 = vadd.f32 1.0, %v1031_v51  ;;  %v384_v33 = vmul.f32 %v382_v52, %v1258_v61  ;;  %v424_v60 = vadd.f32 %v1379_v9, %v423_v53  ;;  %v473_v62 = vsub.f32 1.0, %v472_v48  ;;  %vm427_vm12 = vmor %vm425_vm11, %vm426_vm10  ;;  %v336_v51 = vpop.permute.xlu0 %335 }
  0xb7   :  { %v1441_v41 = vpop.eup %1034  ;;  %v1445_v59 = vadd.f32 1.0, %v1033_v55  ;;  %v432_v57 = vor.u32 1.1754944e-38, %v431_v47  ;;  %v480_v0 = vand.u32 2147483647, %v1337_v3  ;;  %v482_v1 = vand.u32 2147483648, %v1337_v3  ;;  %v489_v47 = vpop.permute.xlu1 %488 }
  0xb8   :  { %v1450_v61 = vpop.eup %1036  ;;  %v428_v63 = vsel %vm427_vm12, %v1379_v9, %v424_v60  ;;  %v474_v6 = vmul.f32 %v1385_v54, %v473_v62  ;;  %vm477_vm14 = vweird.f32 %v1385_v54  ;;  %v319_v10 = vmul.f32 %v1346_v18, %v1297_v29 }
  0xb9   :  { %1040 = vrcp.f32 %v1437_v56  ;;  %v1458_v12 = vmul.f32 %v387_v46, %v384_v33  ;;  %v433_v14 = vsel %vm430_vm13, %v432_v57, %v428_v63  ;;  %vm476_vm15 = vweird.f32 %v1337_v3 }
  0xba   :  { %1042 = vrcp.f32 %v1445_v59  ;;  %v435_v39 = vmul.f32 %v433_v14, %v1263_v2  ;;  %v475_v9 = vadd.f32 %v1385_v54, %v474_v6  ;;  %v320_v16 = vsub.f32 1.0, %v319_v10  ;;  %v1464_v36 = vpop.eup %1038  ;;  %vm478_vm0 = vmor %vm476_vm15, %vm477_vm14 }
  0xbb   :  { %vm481_vm1 = vcmp.eq.f32.partialorder %v480_v0, 8.507059e+37  ;;  %v483_v17 = vor.u32 1.1754944e-38, %v482_v1  ;;  %v329_v19 = vand.u32 2147483648, %v1297_v29  ;;  %v523_v40 = vmul.f32 %v1406_v25, %v1351_v20 }
  0xbc   :  { %v479_v3 = vsel %vm478_vm0, %v1385_v54, %v475_v9  ;;  %v321_v23 = vmul.f32 %v1346_v18, %v320_v16  ;;  %vm324_vm2 = vweird.f32 %v1346_v18  ;;  %v327_v2 = vand.u32 2147483647, %v1297_v29 }
  0xbd   :  { %v484_v24 = vsel %vm481_vm1, %v483_v17, %v479_v3  ;;  %vm323_vm3 = vweird.f32 %v1297_v29  ;;  %v524_v5 = vsub.f32 1.0, %v523_v40  ;;  %vm527_vm4 = vweird.f32 %v1351_v20  ;;  %v540_v0 = vpop.permute.xlu2 %539 }
  0xbe   :  { %v440_v27 = vmul.f32 %v438_v15, %v435_v39  ;;  %v322_v30 = vadd.f32 %v1346_v18, %v321_v23  ;;  %vm528_vm5 = vweird.f32 %v1406_v25  ;;  %v533_v32 = vand.u32 2147483648, %v1351_v20  ;;  %vm325_vm6 = vmor %vm323_vm3, %vm324_vm2 }
  0xbf   :  { %v1478_v54 = vpop.eup %1040  ;;  %v330_v13 = vor.u32 1.1754944e-38, %v329_v19  ;;  %v525_v49 = vmul.f32 %v1406_v25, %v524_v5  ;;  %v531_v35 = vand.u32 2147483647, %v1351_v20  ;;  %v625_v29 = vmul.f32 %v1441_v41, %v1403_v8  ;;  %vm529_vm9 = vmor %vm527_vm4, %vm528_vm5 }
  0xc0   :  { %v1484_v37 = vpop.eup %1042  ;;  %v486_v43 = vmul.f32 %v484_v24, %v1269_v7  ;;  %v326_v44 = vsel %vm325_vm6, %v1346_v18, %v322_v30  ;;  %vm328_vm7 = vcmp.eq.f32.partialorder %v327_v2, 8.507059e+37  ;;  %vm629_vm8 = vweird.f32 %v1403_v8  ;;  %v642_v30 = vpop.permute.xlu1 %641 }
  0xc1   :  { %v331_v52 = vsel %vm328_vm7, %v330_v13, %v326_v44  ;;  %v526_v53 = vadd.f32 %v1406_v25, %v525_v49  ;;  %v626_v48 = vsub.f32 1.0, %v625_v29  ;;  %v633_v55 = vand.u32 2147483647, %v1403_v8 }
  0xc2   :  { %v333_v33 = vmul.f32 %v331_v52, %v1245_v50  ;;  %v534_v7 = vor.u32 1.1754944e-38, %v533_v32  ;;  %vm630_vm10 = vweird.f32 %v1441_v41  ;;  %v676_v18 = vmul.f32 %v1450_v61, %v1412_v21 }
  0xc3   :  { %v530_v60 = vsel %vm529_vm9, %v1406_v25, %v526_v53  ;;  %vm532_vm11 = vcmp.eq.f32.partialorder %v531_v35, 8.507059e+37  ;;  %v627_v62 = vmul.f32 %v1441_v41, %v626_v48  ;;  %v635_v46 = vand.u32 2147483648, %v1403_v8  ;;  %vm631_vm14 = vmor %vm629_vm8, %vm630_vm10 }
  0xc4   :  { %v491_v57 = vmul.f32 %v489_v47, %v486_v43  ;;  %v338_v50 = vmul.f32 %v336_v51, %v333_v33  ;;  %v535_v1 = vsel %vm532_vm11, %v534_v7, %v530_v60  ;;  %v677_v63 = vsub.f32 1.0, %v676_v18  ;;  %v591_v51 = vpop.permute.xlu0 %590 }
  0xc5   :  { %v628_v20 = vadd.f32 %v1441_v41, %v627_v62  ;;  %vm1503_vm12 = vcmp.eq.f32.partialorder %v633_v55, 8.507059e+37  ;;  %vm680_vm13 = vweird.f32 %v1412_v21  ;;  %v686_v25 = vand.u32 2147483648, %v1412_v21  ;;  %v693_v29 = vpop.permute.xlu2 %692 }
  0xc6   :  { %v339_v10 = vadd.f32 %v338_v50, %v1443_v58  ;;  %v678_v14 = vmul.f32 %v1450_v61, %v677_v63  ;;  %vm681_vm15 = vweird.f32 %v1450_v61  ;;  %v574_v15 = vmul.f32 %v1416_v26, %v1375_v42 }
  0xc7   :  { %v537_v39 = vmul.f32 %v535_v1, %v1276_v11  ;;  %v632_v9 = vsel %vm631_vm14, %v1441_v41, %v628_v20  ;;  %v636_v16 = vor.u32 1.1754944e-38, %v635_v46  ;;  %v684_v17 = vand.u32 2147483647, %v1412_v21  ;;  %vm682_vm0 = vmor %vm680_vm13, %vm681_vm15 }
  0xc8   :  { %v390_v58 = vadd.f32 %v1458_v12, %v339_v10  ;;  %v679_v19 = vadd.f32 %v1450_v61, %v678_v14  ;;  %v687_v8 = vor.u32 1.1754944e-38, %v686_v25  ;;  %v575_v40 = vsub.f32 1.0, %v574_v15  ;;  %v744_v63 = vpop.permute.xlu1 %743 }
  0xc9   :  { %v637_v3 = vsel %vm1503_vm12, %v636_v16, %v632_v9  ;;  %vm579_vm1 = vweird.f32 %v1416_v26  ;;  %v582_v11 = vand.u32 2147483647, %v1375_v42  ;;  %v584_v41 = vand.u32 2147483648, %v1375_v42 }
  0xca   :  { %v441_v23 = vadd.f32 %v440_v27, %v390_v58  ;;  %v683_v2 = vsel %vm682_vm0, %v1450_v61, %v679_v19  ;;  %v576_v12 = vmul.f32 %v1416_v26, %v575_v40  ;;  %v727_v24 = vmul.f32 %v1464_v36, %v1422_v31 }
  0xcb   :  { %v542_v5 = vmul.f32 %v540_v0, %v537_v39  ;;  %vm685_vm2 = vcmp.eq.f32.partialorder %v684_v17, 8.507059e+37  ;;  %vm578_vm3 = vweird.f32 %v1375_v42  ;;  %v639_v35 = vmul.f32 %v637_v3, %v1306_v38 }
  0xcc   :  { %v492_v21 = vadd.f32 %v491_v57, %v441_v23  ;;  %v688_v32 = vsel %vm685_vm2, %v687_v8, %v683_v2  ;;  %v577_v13 = vadd.f32 %v1416_v26, %v576_v12  ;;  %v728_v49 = vsub.f32 1.0, %v727_v24  ;;  %vm580_vm4 = vmor %vm578_vm3, %vm579_vm1  ;;  %v846_v40 = vpop.permute.xlu0 %845 }
  0xcd   :  { %vm583_vm5 = vcmp.eq.f32.partialorder %v582_v11, 8.507059e+37  ;;  %v585_v61 = vor.u32 1.1754944e-38, %v584_v41  ;;  %v737_v27 = vand.u32 2147483648, %v1422_v31  ;;  %vm732_vm6 = vweird.f32 %v1464_v36  ;;  %v795_v9 = vpop.permute.xlu2 %794 }
  0xce   :  { %v581_v43 = vsel %vm580_vm4, %v1416_v26, %v577_v13  ;;  %v729_v44 = vmul.f32 %v1464_v36, %v728_v49  ;;  %v735_v42 = vand.u32 2147483647, %v1422_v31  ;;  %v690_v47 = vmul.f32 %v688_v32, %v1354_v22 }
  0xcf   :  { %v586_v38 = vsel %vm583_vm5, %v585_v61, %v581_v43  ;;  %v778_v52 = vmul.f32 %v1478_v54, %v1437_v56  ;;  %v543_v53 = vadd.f32 %v542_v5, %v492_v21  ;;  %vm731_vm7 = vweird.f32 %v1422_v31 }
  0xd0   :  { %v588_v48 = vmul.f32 %v586_v38, %v1302_v34  ;;  %v730_v55 = vadd.f32 %v1464_v36, %v729_v44  ;;  %v644_v26 = vmul.f32 %v642_v30, %v639_v35  ;;  %vm733_vm8 = vmor %vm731_vm7, %vm732_vm6  ;;  %v738_v33 = vor.u32 1.1754944e-38, %v737_v27  ;;  %v853_v23 = vpop.permute.xlu1 %852 }
  0xd1   :  { %v779_v7 = vsub.f32 1.0, %v778_v52  ;;  %v829_v18 = vmul.f32 %v1484_v37, %v1445_v59  ;;  %vm736_vm9 = vcmp.eq.f32.partialorder %v735_v42, 8.507059e+37  ;;  %v788_v62 = vand.u32 2147483648, %v1437_v56 }
  0xd2   :  { %v593_v22 = vmul.f32 %v591_v51, %v588_v48  ;;  %v734_v60 = vsel %vm733_vm8, %v1464_v36, %v730_v55  ;;  %vm783_vm10 = vweird.f32 %v1478_v54  ;;  %v786_v31 = vand.u32 2147483647, %v1437_v56 }
  0xd3   :  { %v739_v46 = vsel %vm736_vm9, %v738_v33, %v734_v60  ;;  %v780_v34 = vmul.f32 %v1478_v54, %v779_v7  ;;  %v695_v57 = vmul.f32 %v693_v29, %v690_v47  ;;  %v830_v1 = vsub.f32 1.0, %v829_v18 }
  0xd4   :  { %v594_v50 = vadd.f32 %v593_v22, %v543_v53  ;;  %v741_v0 = vmul.f32 %v739_v46, %v1364_v28  ;;  %vm782_vm11 = vweird.f32 %v1437_v56  ;;  %vm834_vm12 = vweird.f32 %v1484_v37 }
  0xd5   :  { %v781_v20 = vadd.f32 %v1478_v54, %v780_v34  ;;  %v839_v36 = vand.u32 2147483648, %v1445_v59  ;;  %vm784_vm13 = vmor %vm782_vm11, %vm783_vm10  ;;  %v789_v25 = vor.u32 1.1754944e-38, %v788_v62  ;;  %v831_v10 = vmul.f32 %v1484_v37, %v830_v1 }
  0xd6   :  { %v645_v6 = vadd.f32 %v644_v26, %v594_v50  ;;  %v837_v14 = vand.u32 2147483647, %v1445_v59  ;;  %vm787_vm14 = vcmp.eq.f32.partialorder %v786_v31, 8.507059e+37  ;;  %vm833_vm15 = vweird.f32 %v1445_v59 }
  0xd7   :  { %v785_v15 = vsel %vm784_vm13, %v1478_v54, %v781_v20  ;;  %v746_v39 = vmul.f32 %v744_v63, %v741_v0  ;;  %v832_v16 = vadd.f32 %v1484_v37, %v831_v10  ;;  %vm835_vm0 = vmor %vm833_vm15, %vm834_vm12  ;;  %v840_v58 = vor.u32 1.1754944e-38, %v839_v36 }
  0xd8   :  { %v696_v28 = vadd.f32 %v695_v57, %v645_v6  ;;  %v790_v56 = vsel %vm787_vm14, %v789_v25, %v785_v15  ;;  %vm838_vm1 = vcmp.eq.f32.partialorder %v837_v14, 8.507059e+37  ;;  %vm876_vm6 = vcmask 15360  }
  0xd9   :  { %v792_v17 = vmul.f32 %v790_v56, %v1395_v45  ;;  %v836_v8 = vsel %vm835_vm0, %v1484_v37, %v832_v16 }
  0xda   :  { %v747_v19 = vadd.f32 %v746_v39, %v696_v28  ;;  %v841_v3 = vsel %vm838_vm1, %v840_v58, %v836_v8 }
  0xdb   :  { %v797_v54 = vmul.f32 %v795_v9, %v792_v17  ;;  %v843_v59 = vmul.f32 %v841_v3, %v1399_v4 }
  0xdd   :  { %v798_v11 = vadd.f32 %v797_v54, %v747_v19  ;;  %v848_v41 = vmul.f32 %v846_v40, %v843_v59 }
  0xdf   :  { %v849_v2 = vadd.f32 %v848_v41, %v798_v11 }
  0xe1   :  { %v855_v12 = vadd.f32 %v853_v23, %v849_v2 }
  0xe3   :  { %v945_v24 = vmul.f32 -1.442695, %v855_v12 }
  0xe5   :  { %1044 = vpow2.f32 %v945_v24 }
  0xeb   :  { %v1045_v45 = vpop.eup %1044 }
  0xec   :  { %v859_v5 = vadd.f32 1.0, %v1045_v45 }
  0xee   :  { %1046 = vrcp.f32 %v859_v5  ;;  %v871_v37 = vand.u32 2147483648, %v859_v5  ;;  %v869_v49 = vand.u32 2147483647, %v859_v5  ;;  %vm865_vm3 = vweird.f32 %v859_v5 }
  0xf0   :  { %v872_v4 = vor.u32 1.1754944e-38, %v871_v37  ;;  %vm870_vm5 = vcmp.eq.f32.partialorder %v869_v49, 8.507059e+37 }
  0xf4   :  { %v1047_v30 = vpop.eup %1046 }
  0xf5   :  { %v861_v21 = vmul.f32 %v1047_v30, %v859_v5  ;;  %vm866_vm2 = vweird.f32 %v1047_v30 }
  0xf6   :  { %vm867_vm4 = vmor %vm865_vm3, %vm866_vm2 }
  0xf7   :  { %v862_v32 = vsub.f32 1.0, %v861_v21 }
  0xf9   :  { %v863_v13 = vmul.f32 %v1047_v30, %v862_v32 }
  0xfb   :  { %v864_v35 = vadd.f32 %v1047_v30, %v863_v13 }
  0xfd   :  { %v868_v61 = vsel %vm867_vm4, %v1047_v30, %v864_v35 }
  0xfe   :  { %v873_v27 = vsel %vm870_vm5, %v872_v4, %v868_v61 }
  0xff   :  { %v875_v29 = vmul.f32 %v873_v27, %v855_v12 }
 0x101   :  { %877 = vst.msk [vmem:[%s1580_s5] sm:$0xff] %vm876_vm6, %v875_v29 }

</bundles_post_ra>
